<compile_context>
chip_gen: v7x
topology: tpu7x:2x2x1
jax: 0.10.0
libtpu: 0.0.40
codegen_flags: <defaults>
</compile_context>

<pallas_src>
import functools

import jax
import jax.numpy as jnp
from jax.experimental import pallas as pl
from jax.experimental.pallas import tpu as pltpu


def _sublayer_ffn_kernel(x_ref, g_ref, bt_ref, w1_ref, b1_ref, w2_ref, b2_ref,
                         o_ref, xn_ref, acc_ref, *, eps, compute_dtype):
    # x_ref:  (tm, d_model)        g_ref/bt_ref/b2_ref: (1, d_model)
    # w1_ref: (d_model, tk)        b1_ref: (1, tk)
    # w2_ref: (tk, d_model)        o_ref:  (tm, d_model)
    # xn_ref: (tm, d_model) scratch (compute dtype)   acc_ref: (tm, d_model) f32
    k = pl.program_id(1)

    @pl.when(k == 0)
    def _init():
        # LayerNorm(x) in f32, computed once per row tile (x block is constant in k).
        x = x_ref[...].astype(jnp.float32)
        mean = jnp.mean(x, axis=-1, keepdims=True)
        xc = x - mean
        var = jnp.mean(xc * xc, axis=-1, keepdims=True)
        inv = jax.lax.rsqrt(var + eps)
        xn = xc * inv * g_ref[...].astype(jnp.float32) + bt_ref[...].astype(jnp.float32)
        xn_ref[...] = xn.astype(compute_dtype)
        # Residual + output bias added exactly once per output tile (not per k step).
        acc_ref[...] = x + b2_ref[...].astype(jnp.float32)

    # Partial FFN contribution for this d_ff chunk: relu(xn @ W1_k + b1_k) @ W2_k
    h = jnp.dot(xn_ref[...], w1_ref[...], preferred_element_type=jnp.float32)
    h = jnp.maximum(h + b1_ref[...].astype(jnp.float32), 0.0)
    # TODO(synk): training-mode dropout (pltpu.prng_seed + pltpu.prng_random_bits mask
    # on h) is omitted; eval-mode nn.Dropout is identity.
    acc_ref[...] += jnp.dot(h.astype(compute_dtype), w2_ref[...],
                            preferred_element_type=jnp.float32)

    @pl.when(k == pl.num_programs(1) - 1)
    def _finalize():
        o_ref[...] = acc_ref[...].astype(o_ref.dtype)


def _largest_tile(total, preferred, align):
    """Largest divisor of `total` that is <= preferred and a multiple of `align`
    (falls back to `total` itself, which is always legal as a full-extent block)."""
    t = min(preferred, total)
    if total % t == 0 and (t % align == 0 or t == total):
        return t
    best = None
    d = align
    while d <= min(preferred, total):
        if total % d == 0:
            best = d
        d += align
    return best if best is not None else total


def sublayer_connection_ffn(x, gamma, beta, w1, b1, w2, b2, *,
                            eps=1e-5, tm=256, tk_ff=2048,
                            vmem_budget_bytes=28 * 1024 * 1024):
    """y = x + FFN(LayerNorm(x));  x: [batch, seq, d_model] -> same shape.

    Weights are stored pre-transposed: W1 [d_model, d_ff], W2 [d_ff, d_model],
    so y_ffn = relu(xn @ W1 + b1) @ W2 + b2 (matches PyTorch x @ W^T + b).
    The matmul path runs in w1.dtype (pass bf16 weights for bf16 MXU) with f32 accum.
    """
    batch, seq, d_model = x.shape
    d_ff = w1.shape[1]
    M = batch * seq
    compute_dtype = w1.dtype

    # Tile selection (tm rows per grid step; tk columns of d_ff per reduction step).
    tm = _largest_tile(M, tm, 8)
    tk = _largest_tile(d_ff, tk_ff, 128)

    itemsize = lambda dt: jnp.dtype(dt).itemsize
    bx, bw, bo = itemsize(x.dtype), itemsize(compute_dtype), itemsize(x.dtype)

    def vmem_est(tm_, tk_):
        return (2 * tm_ * d_model * bx                        # x tile (double-buffered)
                + 2 * 2 * d_model * itemsize(gamma.dtype)     # gamma + beta blocks
                + 2 * (d_model * tk_ + tk_) * bw              # W1 + b1 chunk
                + 2 * (tk_ * d_model + d_model) * bw          # W2 chunk + b2
                + 2 * tm_ * d_model * bo                      # out tile
                + tm_ * d_model * bw                          # xn scratch
                + tm_ * d_model * 4)                          # f32 accumulator

    # Shrink tk first (weights dominate), then tm, to stay within the VMEM budget.
    while (vmem_est(tm, tk) > vmem_budget_bytes and tk > 128
           and tk % 256 == 0 and d_ff % (tk // 2) == 0):
        tk //= 2
    while (vmem_est(tm, tk) > vmem_budget_bytes and tm > 8
           and tm % 16 == 0 and M % (tm // 2) == 0):
        tm //= 2

    vmem_limit = int(min(max(2 * vmem_est(tm, tk), 32 * 1024 * 1024),
                         56 * 1024 * 1024))

    x2d = x.reshape(M, d_model)
    g2d = gamma.reshape(1, d_model)
    bt2d = beta.reshape(1, d_model)
    b1_2d = b1.reshape(1, d_ff)
    b2_2d = b2.reshape(1, d_model)

    kernel = functools.partial(_sublayer_ffn_kernel, eps=eps,
                               compute_dtype=compute_dtype)

    out2d = pl.pallas_call(
        kernel,
        out_shape=jax.ShapeDtypeStruct((M, d_model), x.dtype),
        grid_spec=pltpu.PrefetchScalarGridSpec(
            num_scalar_prefetch=0,
            grid=(M // tm, d_ff // tk),
            in_specs=[
                pl.BlockSpec((tm, d_model), lambda i, k: (i, 0)),   # x tile
                pl.BlockSpec((1, d_model), lambda i, k: (0, 0)),    # gamma
                pl.BlockSpec((1, d_model), lambda i, k: (0, 0)),    # beta
                pl.BlockSpec((d_model, tk), lambda i, k: (0, k)),   # W1 chunk
                pl.BlockSpec((1, tk), lambda i, k: (0, k)),         # b1 chunk
                pl.BlockSpec((tk, d_model), lambda i, k: (k, 0)),   # W2 chunk
                pl.BlockSpec((1, d_model), lambda i, k: (0, 0)),    # b2
            ],
            out_specs=pl.BlockSpec((tm, d_model), lambda i, k: (i, 0)),
            scratch_shapes=[
                pltpu.VMEM((tm, d_model), compute_dtype),   # LayerNorm(x) tile
                pltpu.VMEM((tm, d_model), jnp.float32),     # f32 accumulator
            ],
        ),
        compiler_params=pltpu.CompilerParams(
            dimension_semantics=("parallel", "arbitrary"),
            vmem_limit_bytes=vmem_limit,
        ),
    )(x2d, g2d, bt2d, w1, b1_2d, w2, b2_2d)

    return out2d.reshape(batch, seq, d_model)


def _reference(x, gamma, beta, w1, b1, w2, b2, eps=1e-5):
    mean = jnp.mean(x, axis=-1, keepdims=True)
    var = jnp.mean((x - mean) ** 2, axis=-1, keepdims=True)
    xn = (x - mean) / jnp.sqrt(var + eps) * gamma + beta
    h = jnp.maximum(xn @ w1 + b1, 0.0)
    return x + (h @ w2 + b2)   # dropout = identity in eval mode


if __name__ == "__main__":
    # Small shapes; d_model/d_ff kept lane-dense (multiples of 128) per the review.
    batch, seq, d_model, d_ff = 2, 8, 128, 256

    key = jax.random.PRNGKey(0)
    kx, kw1, kb1, kw2, kb2 = jax.random.split(key, 5)

    x = jax.random.normal(kx, (batch, seq, d_model), dtype=jnp.float32)
    gamma = jnp.ones((d_model,), jnp.float32)    # LayerNorm init: weight=1
    beta = jnp.zeros((d_model,), jnp.float32)    # LayerNorm init: bias=0
    w1 = jax.random.normal(kw1, (d_model, d_ff), dtype=jnp.float32) * 0.1
    b1 = jax.random.normal(kb1, (d_ff,), dtype=jnp.float32) * 0.1
    w2 = jax.random.normal(kw2, (d_ff, d_model), dtype=jnp.float32) * 0.1
    b2 = jax.random.normal(kb2, (d_model,), dtype=jnp.float32) * 0.1

    # f32 path; tk_ff=128 so the d_ff reduction axis runs >1 step (exercises accum).
    out = sublayer_connection_ffn(x, gamma, beta, w1, b1, w2, b2, tk_ff=128)
    out = jax.block_until_ready(out)
    ref = _reference(x, gamma, beta, w1, b1, w2, b2)
    assert out.shape == (batch, seq, d_model)
    assert jnp.allclose(out, ref, atol=1e-3, rtol=1e-3), "f32 mismatch vs reference"

    # bf16 operands / f32 accumulation path (halves weight DMA bytes, 2x MXU rate).
    cast = lambda a: a.astype(jnp.bfloat16)
    out_bf16 = sublayer_connection_ffn(cast(x), cast(gamma), cast(beta),
                                       cast(w1), cast(b1), cast(w2), cast(b2),
                                       tk_ff=128)
    out_bf16 = jax.block_until_ready(out_bf16)
    ref_bf16 = _reference(cast(x).astype(jnp.float32), cast(gamma).astype(jnp.float32),
                          cast(beta).astype(jnp.float32), cast(w1).astype(jnp.float32),
                          cast(b1).astype(jnp.float32), cast(w2).astype(jnp.float32),
                          cast(b2).astype(jnp.float32))
    assert out_bf16.shape == (batch, seq, d_model)
    assert jnp.allclose(out_bf16.astype(jnp.float32), ref_bf16,
                        atol=0.15, rtol=0.15), "bf16 mismatch vs reference"

    print("KERNEL_OK")
</pallas_src>

<mosaic_0001>
module attributes {stable_mosaic.version = 11 : i64} {
  func.func @_sublayer_ffn_kernel(%arg0: i32, %arg1: i32, %arg2: memref<16x128xf32, #tpu.memory_space<vmem>>, %arg3: memref<1x128xf32, #tpu.memory_space<vmem>>, %arg4: memref<1x128xf32, #tpu.memory_space<vmem>>, %arg5: memref<128x128xf32, #tpu.memory_space<vmem>>, %arg6: memref<1x128xf32, #tpu.memory_space<vmem>>, %arg7: memref<128x128xf32, #tpu.memory_space<vmem>>, %arg8: memref<1x128xf32, #tpu.memory_space<vmem>>, %arg9: memref<16x128xf32, #tpu.memory_space<vmem>>, %arg10: memref<16x128xf32, #tpu.memory_space<vmem>>, %arg11: memref<16x128xf32, #tpu.memory_space<vmem>>) attributes {dimension_semantics = [#tpu.dimension_semantics<parallel>, #tpu.dimension_semantics<arbitrary>], iteration_bounds = array<i64: 1, 2>, scalar_prefetch = 0 : i64, scratch_operands = 2 : i64, tpu.core_type = #tpu.core_type<tc>, window_params = [{transform_indices = @transform_0, window_bounds = array<i64: 16, 128>}, {pipeline_mode = #tpu.pipeline_mode<synchronous>, transform_indices = @transform_1, window_bounds = array<i64: 1, 128>}, {pipeline_mode = #tpu.pipeline_mode<synchronous>, transform_indices = @transform_2, window_bounds = array<i64: 1, 128>}, {transform_indices = @transform_3, window_bounds = array<i64: 128, 128>}, {transform_indices = @transform_4, window_bounds = array<i64: 1, 128>}, {transform_indices = @transform_5, window_bounds = array<i64: 128, 128>}, {pipeline_mode = #tpu.pipeline_mode<synchronous>, transform_indices = @transform_6, window_bounds = array<i64: 1, 128>}, {transform_indices = @transform_7, window_bounds = array<i64: 16, 128>}]} {
    %c0_i32 = arith.constant 0 : i32
    %0 = arith.cmpi eq, %arg1, %c0_i32 : i32
    %1 = arith.extui %0 : i1 to i32
    %c0_i32_0 = arith.constant 0 : i32
    %2 = arith.cmpi ne, %1, %c0_i32_0 : i32
    scf.if %2 {
      %c0_15 = arith.constant 0 : index
      %c0_16 = arith.constant 0 : index
      %19 = vector.load %arg2[%c0_15, %c0_16] : memref<16x128xf32, #tpu.memory_space<vmem>>, vector<16x128xf32>
      %cst_17 = arith.constant dense<0.000000e+00> : vector<16xf32>
      %20 = vector.multi_reduction <add>, %19, %cst_17 [1] : vector<16x128xf32> to vector<16xf32>
      %21 = vector.shape_cast %20 : vector<16xf32> to vector<16x1xf32>
      %cst_18 = arith.constant 1.280000e+02 : f32
      %22 = vector.broadcast %cst_18 : f32 to vector<16x1xf32>
      %23 = arith.divf %21, %22 : vector<16x1xf32>
      %24 = vector.broadcast %23 : vector<16x1xf32> to vector<16x128xf32>
      %25 = arith.subf %19, %24 : vector<16x128xf32>
      %26 = arith.mulf %25, %25 : vector<16x128xf32>
      %cst_19 = arith.constant dense<0.000000e+00> : vector<16xf32>
      %27 = vector.multi_reduction <add>, %26, %cst_19 [1] : vector<16x128xf32> to vector<16xf32>
      %28 = vector.shape_cast %27 : vector<16xf32> to vector<16x1xf32>
      %cst_20 = arith.constant 1.280000e+02 : f32
      %29 = vector.broadcast %cst_20 : f32 to vector<16x1xf32>
      %30 = arith.divf %28, %29 : vector<16x1xf32>
      %cst_21 = arith.constant 9.99999974E-6 : f32
      %31 = vector.broadcast %cst_21 : f32 to vector<16x1xf32>
      %32 = arith.addf %30, %31 : vector<16x1xf32>
      %33 = math.rsqrt %32 : vector<16x1xf32>
      %34 = vector.broadcast %33 : vector<16x1xf32> to vector<16x128xf32>
      %35 = arith.mulf %25, %34 : vector<16x128xf32>
      %c0_22 = arith.constant 0 : index
      %c0_23 = arith.constant 0 : index
      %36 = vector.load %arg3[%c0_22, %c0_23] : memref<1x128xf32, #tpu.memory_space<vmem>>, vector<1x128xf32>
      %37 = vector.broadcast %36 : vector<1x128xf32> to vector<16x128xf32>
      %38 = arith.mulf %35, %37 : vector<16x128xf32>
      %c0_24 = arith.constant 0 : index
      %c0_25 = arith.constant 0 : index
      %39 = vector.load %arg4[%c0_24, %c0_25] : memref<1x128xf32, #tpu.memory_space<vmem>>, vector<1x128xf32>
      %40 = vector.broadcast %39 : vector<1x128xf32> to vector<16x128xf32>
      %41 = arith.addf %38, %40 : vector<16x128xf32>
      %c0_26 = arith.constant 0 : index
      %c0_27 = arith.constant 0 : index
      %42 = vector.load %arg10[%c0_26, %c0_27] : memref<16x128xf32, #tpu.memory_space<vmem>>, vector<16x128xf32>
      tpu.vector_store %arg10[%c0_26, %c0_27], %41 {strides = array<i32>} : memref<16x128xf32, #tpu.memory_space<vmem>>, vector<16x128xf32>,
      %c0_28 = arith.constant 0 : index
      %c0_29 = arith.constant 0 : index
      %43 = vector.load %arg8[%c0_28, %c0_29] : memref<1x128xf32, #tpu.memory_space<vmem>>, vector<1x128xf32>
      %44 = vector.broadcast %43 : vector<1x128xf32> to vector<16x128xf32>
      %45 = arith.addf %19, %44 : vector<16x128xf32>
      %c0_30 = arith.constant 0 : index
      %c0_31 = arith.constant 0 : index
      %46 = vector.load %arg11[%c0_30, %c0_31] : memref<16x128xf32, #tpu.memory_space<vmem>>, vector<16x128xf32>
      tpu.vector_store %arg11[%c0_30, %c0_31], %45 {strides = array<i32>} : memref<16x128xf32, #tpu.memory_space<vmem>>, vector<16x128xf32>,
    } else {
    }
    %c0 = arith.constant 0 : index
    %c0_1 = arith.constant 0 : index
    %3 = vector.load %arg10[%c0, %c0_1] : memref<16x128xf32, #tpu.memory_space<vmem>>, vector<16x128xf32>
    %c0_2 = arith.constant 0 : index
    %c0_3 = arith.constant 0 : index
    %4 = vector.load %arg5[%c0_2, %c0_3] : memref<128x128xf32, #tpu.memory_space<vmem>>, vector<128x128xf32>
    %cst = arith.constant dense<0.000000e+00> : vector<16x128xf32>
    %5 = tpu.matmul %3, %4, %cst {dimension_numbers = #tpu.dot_dimension_numbers<[1], [0], [0], [1], [0, 0, 1, 1], [], []>} : vector<16x128xf32>, vector<128x128xf32>, vector<16x128xf32> -> vector<16x128xf32>
    %c0_4 = arith.constant 0 : index
    %c0_5 = arith.constant 0 : index
    %6 = vector.load %arg6[%c0_4, %c0_5] : memref<1x128xf32, #tpu.memory_space<vmem>>, vector<1x128xf32>
    %7 = vector.broadcast %6 : vector<1x128xf32> to vector<16x128xf32>
    %8 = arith.addf %5, %7 : vector<16x128xf32>
    %cst_6 = arith.constant 0.000000e+00 : f32
    %9 = vector.broadcast %cst_6 : f32 to vector<16x128xf32>
    %10 = arith.maximumf %8, %9 : vector<16x128xf32>
    %c0_7 = arith.constant 0 : index
    %c0_8 = arith.constant 0 : index
    %11 = vector.load %arg11[%c0_7, %c0_8] : memref<16x128xf32, #tpu.memory_space<vmem>>, vector<16x128xf32>
    %c0_9 = arith.constant 0 : index
    %c0_10 = arith.constant 0 : index
    %12 = vector.load %arg7[%c0_9, %c0_10] : memref<128x128xf32, #tpu.memory_space<vmem>>, vector<128x128xf32>
    %cst_11 = arith.constant dense<0.000000e+00> : vector<16x128xf32>
    %13 = tpu.matmul %10, %12, %cst_11 {dimension_numbers = #tpu.dot_dimension_numbers<[1], [0], [0], [1], [0, 0, 1, 1], [], []>} : vector<16x128xf32>, vector<128x128xf32>, vector<16x128xf32> -> vector<16x128xf32>
    %14 = arith.addf %11, %13 : vector<16x128xf32>
    %c0_12 = arith.constant 0 : index
    %c0_13 = arith.constant 0 : index
    %15 = vector.load %arg11[%c0_12, %c0_13] : memref<16x128xf32, #tpu.memory_space<vmem>>, vector<16x128xf32>
    tpu.vector_store %arg11[%c0_12, %c0_13], %14 {strides = array<i32>} : memref<16x128xf32, #tpu.memory_space<vmem>>, vector<16x128xf32>,
    %c1_i32 = arith.constant 1 : i32
    %16 = arith.cmpi eq, %arg1, %c1_i32 : i32
    %17 = arith.extui %16 : i1 to i32
    %c0_i32_14 = arith.constant 0 : i32
    %18 = arith.cmpi ne, %17, %c0_i32_14 : i32
    scf.if %18 {
      %c0_15 = arith.constant 0 : index
      %c0_16 = arith.constant 0 : index
      %19 = vector.load %arg11[%c0_15, %c0_16] : memref<16x128xf32, #tpu.memory_space<vmem>>, vector<16x128xf32>
      %c0_17 = arith.constant 0 : index
      %c0_18 = arith.constant 0 : index
      %20 = vector.load %arg9[%c0_17, %c0_18] : memref<16x128xf32, #tpu.memory_space<vmem>>, vector<16x128xf32>
      tpu.vector_store %arg9[%c0_17, %c0_18], %19 {strides = array<i32>} : memref<16x128xf32, #tpu.memory_space<vmem>>, vector<16x128xf32>,
    } else {
    }
    return
  }
  func.func @transform_0(%arg0: i32, %arg1: i32) -> (i32, i32) {
    %c0_i32 = arith.constant 0 : i32
    %c0_i32_0 = arith.constant 0 : i32
    return %arg0, %c0_i32 : i32, i32
  }
  func.func @transform_1(%arg0: i32, %arg1: i32) -> (i32, i32) {
    %c0_i32 = arith.constant 0 : i32
    %c0_i32_0 = arith.constant 0 : i32
    %c0_i32_1 = arith.constant 0 : i32
    return %c0_i32, %c0_i32_0 : i32, i32
  }
  func.func @transform_2(%arg0: i32, %arg1: i32) -> (i32, i32) {
    %c0_i32 = arith.constant 0 : i32
    %c0_i32_0 = arith.constant 0 : i32
    %c0_i32_1 = arith.constant 0 : i32
    return %c0_i32, %c0_i32_0 : i32, i32
  }
  func.func @transform_3(%arg0: i32, %arg1: i32) -> (i32, i32) {
    %c0_i32 = arith.constant 0 : i32
    %c0_i32_0 = arith.constant 0 : i32
    return %c0_i32, %arg1 : i32, i32
  }
  func.func @transform_4(%arg0: i32, %arg1: i32) -> (i32, i32) {
    %c0_i32 = arith.constant 0 : i32
    %c0_i32_0 = arith.constant 0 : i32
    return %c0_i32, %arg1 : i32, i32
  }
  func.func @transform_5(%arg0: i32, %arg1: i32) -> (i32, i32) {
    %c0_i32 = arith.constant 0 : i32
    %c0_i32_0 = arith.constant 0 : i32
    return %arg1, %c0_i32 : i32, i32
  }
  func.func @transform_6(%arg0: i32, %arg1: i32) -> (i32, i32) {
    %c0_i32 = arith.constant 0 : i32
    %c0_i32_0 = arith.constant 0 : i32
    %c0_i32_1 = arith.constant 0 : i32
    return %c0_i32, %c0_i32_0 : i32, i32
  }
  func.func @transform_7(%arg0: i32, %arg1: i32) -> (i32, i32) {
    %c0_i32 = arith.constant 0 : i32
    %c0_i32_0 = arith.constant 0 : i32
    return %arg0, %c0_i32 : i32, i32
  }
}

</mosaic_0001>

<bundles_post_ra>
// kernel: tpu_custom_call.1
= control target key start
LH: loop header
LB: loop body
LE: loop exit
PB: predicated region body
PF: predicated region fallthrough
CT: control target
= control target key end

     0   :  { %s1562_s0 = inlined_call_operand.hbm [shape: f32[16,128], index: 0, kind: input, shape index: {}]   ;;  %s1563_s1 = inlined_call_operand.vmem [shape: f32[1,128], index: 1, kind: input, shape index: {}]   ;;  %s1564_s2 = inlined_call_operand.vmem [shape: f32[1,128], index: 2, kind: input, shape index: {}]   ;;  %s1565_s3 = inlined_call_operand.hbm [shape: f32[128,256], index: 3, kind: input, shape index: {}]   ;;  %s1566_s4 = inlined_call_operand.vmem [shape: f32[1,256], index: 4, kind: input, shape index: {}]   ;;  %s1567_s5 = inlined_call_operand.hbm [shape: f32[256,128], index: 5, kind: input, shape index: {}]   ;;  %s1568_s6 = inlined_call_operand.vmem [shape: f32[1,128], index: 6, kind: input, shape index: {}]   ;;  %s1569_s7 = inlined_call_operand.hbm [shape: f32[16,128], index: 7, kind: output, shape index: {}]  }
   0x1   :  { %1577 = sst [smem:[#allocation14_spill]] %s1565_s3 }
   0x2   :  { %1578 = sst [smem:[#allocation15_spill]] %s1567_s5 }
   0x3   :  { %12 = vsyncpa [#allocation5], 0 }
   0x4   :  { %13 = vsyncpa [#allocation8], 0 }
   0x5   :  { %15 = vsyncpa [#allocation8 + $0x1], 0 }
   0x6   :  { %16 = vsyncpa [#allocation6], 0  ;;  %s1265_s24 = smov 0   ;;  %s1267_s25 = smov 0  }
   0x7   :  { %s1269_s26 = smov 0   ;;  %s1271_s27 = smov 0  }
   0x8   :  { %s1273_s28 = smov 0   ;;  %s1275_s29 = smov 0  }
   0x9 LB: > { %s31_s30 = sadd.s32 1, %s1210_s28  ;;  %s109_s8 = sadd.s32 1, %s1202_s26  ;;  %s1214_s29 = sphi %s1275_s29, %s22_s29   ;;  %s1210_s28 = sphi %s1273_s28, %s1596_s28   ;;  %s1206_s27 = sphi %s1271_s27, %s1595_s27   ;;  %s1202_s26 = sphi %s1269_s26, %s1594_s26   ;;  %s1198_s25 = sphi %s1267_s25, %s1593_s25   ;;  %s1194_s24 = sphi %s1265_s24, %s1592_s24  }
   0xa   : > { %p32_p0 = scmp.ge.s32.totalorder %s31_s30, 2  ;;  %p116_p1 = scmp.ne.s32.totalorder %s1202_s26, %s1198_s25 }
   0xb   : > { %p117_p2 = scmp.eq.s32.totalorder %s1214_s29, 0  ;;  %p979_p5 = scmp.lt.s32.totalorder %s1214_s29, 2 }
   0xc   : > { %s1598_s30 = smov (%p32_p0, %s31_s30), 0  ;;  %s270_s11 = sand.u32 1, %s1214_s29  }
   0xd   : > { %p1302_p3 = por %p117_p2, %p116_p1  ;;  %s106_s10 = ssub.s32 %s1210_s28, %s1598_s30 }
   0xe   : > { %p107_p4 = scmp.eq.s32.totalorder %s106_s10, 0  ;;  %s272_s12 = sand.u32 1, %s1202_s26  }
   0xf   : > { %s1314_s14 = sshll.u32 %s272_s12, 7  ;;  %s766_s15 = sshll.u32 %s1210_s28, 7 }
  0x10   : > { %s1312_s13 = scalar_select %p107_p4, %s1202_s26, %s109_s8  }
  0x11   : > { %s1580_s3 = sld [smem:[#allocation14_spill]]  ;;  %s274_s19 = scalar_lea.vmem [#allocation7], %s1314_s14 }
  0x12   : > { %s280_s20 = sshll.u32 %s274_s19, 4  ;;  %p1327_p6 = pnand %p979_p5, %p1302_p3  ;;  %s1323_s20 = int_to_ptr.vmem [resolvable:$true] %s280_s20 }
  0x13   : > { %s1331_s22 = scalar_lea.sflag [#allocation8], %s270_s11 }
  0x14   : > { %p1044_p8 = pneg %p1327_p6 }
  0x17   : > { %s1320_s18 = scalar_lea.hbm %s1580_s3, %s766_s15  ;;  %s1047_s9 = scalar_lea.hbm %s1580_s3, 4096 }
  0x18   : > { %s1042_s23 = scalar_lea.hbm %s1320_s18, 2048  ;;  %p1048_p11 = scmp.lt.u32.totalorder %s1320_s18, %s1580_s3 }
  0x19   : > { %p1043_p7 = scmp.ne.s32.totalorder %s1320_s18, %s1042_s23  ;;  %p1049_p12 = scmp.lt.u32.totalorder %s1047_s9, %s1042_s23 }
  0x1a   : > { %p1051_p0 = scmp.lt.u32.totalorder %s1042_s23, %s1320_s18 }
  0x1b   : > { %p1045_p9 = pnand %p1044_p8, %p1043_p7  ;;  %p1050_p13 = por %p1049_p12, %p1048_p11 }
  0x1d   : > { %p1046_p10 = pneg %p1045_p9  ;;  %p1052_p1 = por %p1051_p0, %p1050_p13 }
  0x1f   : > { %p1053_p2 = pnand %p1052_p1, %p1046_p10 }
  0x21   : > { %1056 = shalt.err (!%p1053_p2)
}
  0x22   : > { %s1057_s11 = scalar_lea.vmem %s1323_s20, 2048  ;;  %s1216_s16 = smov [#allocation7]  }
  0x23   : > { %p1058_p3 = scmp.ne.s32.totalorder %s1323_s20, %s1057_s11  ;;  %s1062_s17 = sshll.u32 %s1216_s16, 4  ;;  %s1063_s17 = int_to_ptr.vmem [resolvable:$false] %s1062_s17 }
  0x24   : > { %s1064_s19 = scalar_lea.vmem %s1063_s17, 4096  ;;  %p1065_p7 = scmp.lt.s32.totalorder %s1323_s20, %s1063_s17 }
  0x25   : > { %p1060_p4 = pnand %p1058_p3, %p1044_p8  ;;  %p1066_p9 = scmp.lt.s32.totalorder %s1064_s19, %s1057_s11 }
  0x27   : > { %p1061_p5 = pneg %p1060_p4  ;;  %p1067_p11 = por %p1066_p9, %p1065_p7 }
  0x29   : > { %p1068_p12 = pnand %p1067_p11, %p1061_p5 }
  0x2b   : > { %1071 = shalt.err (!%p1068_p12)
}
  0x2c   : > { %s1217_s23 = smov 256   ;;  %s1570_s8 = smov 128  }
  0x2d   : > { %s1572_s10 = smov 8   ;;  %s1362_s9 = sadd.s32 4294967295, %s1214_s29  }
  0x2e   : > { %974 = dma.hbm_to_vmem [thread:$0]  (!%p1327_p6), %s1320_s18, 2048, %s1323_s20, %s1331_s22, %s1217_s23, %s1570_s8, %s1572_s10  }
  0x2f   : > { %p122_p10 = scmp.ne.s32.totalorder %s1198_s25, %s1194_s24  ;;  %p1574_p13 = scmp.eq.s32.totalorder %s1362_s9, 0 }
  0x30   : > { %p762_p0 = scmp.ge.s32.totalorder %s1214_s29, 1  ;;  %p232_p1 = scmp.lt.s32.totalorder %s1214_s29, 3 }
  0x31   : > { %p1371_p2 = por %p1574_p13, %p122_p10  ;;  %s1220_s18 = smov [#allocation4]  }
  0x32   : > { %p1375_p3 = pnand %p762_p0, %p232_p1  ;;  %s247_s20 = sshll.u32 %s1220_s18, 4  ;;  %s1379_s20 = int_to_ptr.vmem [resolvable:$true] %s247_s20 }
  0x33   : > { %s1582_s12 = scalar_select %p1371_p2, 1, 0 }
  0x34   : > { %s1583_s15 = scalar_select %p1375_p3, 1, 0 }
  0x35   : > { %p967_p4 = pneg %p1375_p3  ;;  %s784_s24 = sshll.u32 %s1210_s28, 11 }
  0x36   : > { %s1584_s5 = sld [smem:[#allocation15_spill]]  ;;  %s300_s19 = scalar_lea.vmem [#allocation9], %s1314_s14 }
  0x37   : > { %s307_s23 = sshll.u32 %s300_s19, 4  ;;  %p1392_p5 = pnand %p967_p4, %p1574_p13  ;;  %s1396_s23 = int_to_ptr.vmem [resolvable:$true] %s307_s23 }
  0x3c   : > { %s1387_s17 = scalar_lea.hbm %s1584_s5, %s784_s24  ;;  %s1077_s16 = scalar_lea.hbm %s1584_s5, 4096 }
  0x3d   : > { %s1072_s18 = scalar_lea.hbm %s1387_s17, 2048  ;;  %p1078_p12 = scmp.lt.u32.totalorder %s1387_s17, %s1584_s5 }
  0x3e   : > { %p1073_p7 = scmp.ne.s32.totalorder %s1387_s17, %s1072_s18  ;;  %p1079_p10 = scmp.lt.u32.totalorder %s1077_s16, %s1072_s18 }
  0x3f   : > { %p1081_p1 = scmp.lt.u32.totalorder %s1072_s18, %s1387_s17 }
  0x40   : > { %p1075_p9 = pnand %p1073_p7, %p1044_p8  ;;  %p1080_p0 = por %p1079_p10, %p1078_p12 }
  0x42   : > { %p1076_p11 = pneg %p1075_p9  ;;  %p1082_p4 = por %p1081_p1, %p1080_p0 }
  0x44   : > { %p1083_p13 = pnand %p1082_p4, %p1076_p11 }
  0x46   : > { %1086 = shalt.err (!%p1083_p13)
}
  0x47   : > { %s1087_s19 = scalar_lea.vmem %s1396_s23, 2048  ;;  %s1221_s24 = smov [#allocation9]  }
  0x48   : > { %p1088_p7 = scmp.ne.s32.totalorder %s1396_s23, %s1087_s19  ;;  %s1092_s11 = sshll.u32 %s1221_s24, 4  ;;  %s1093_s11 = int_to_ptr.vmem [resolvable:$false] %s1092_s11 }
  0x49   : > { %s1094_s10 = scalar_lea.vmem %s1093_s11, 4096  ;;  %p1095_p3 = scmp.lt.s32.totalorder %s1396_s23, %s1093_s11 }
  0x4a   : > { %p1090_p9 = pnand %p1088_p7, %p1044_p8  ;;  %p1096_p12 = scmp.lt.s32.totalorder %s1094_s10, %s1087_s19 }
  0x4c   : > { %p1091_p2 = pneg %p1090_p9  ;;  %p1097_p10 = por %p1096_p12, %p1095_p3 }
  0x4e   : > { %p1098_p0 = pnand %p1097_p10, %p1091_p2 }
  0x50   : > { %1101 = shalt.err (!%p1098_p0)
}
  0x51   : > { %s1586_s18 = smov 8   ;;  %s1587_s16 = smov 128  }
  0x52   : > { %977 = dma.hbm_to_vmem [thread:$0]  (!%p1327_p6), %s1387_s17, 2048, %s1396_s23, %s1331_s22, %s1587_s16, %s1587_s16, %s1586_s18  }
  0x53   : > { %s1102_s24 = scalar_lea.hbm %s1562_s0, 256  ;;  %p1104_p13 = pneg %p1392_p5 }
  0x54   : > { %p1103_p8 = scmp.ne.s32.totalorder %s1562_s0, %s1102_s24  ;;  %p1109_p11 = scmp.lt.u32.totalorder %s1102_s24, %s1562_s0 }
  0x56   : > { %p1105_p2 = pnand %p1104_p13, %p1103_p8 }
  0x58   : > { %p1106_p3 = pneg %p1105_p2 }
  0x5a   : > { %p1111_p1 = pnand %p1109_p11, %p1106_p3 }
  0x5c   : > { %1114 = shalt.err (!%p1111_p1)
}
  0x5d   : > { %s1115_s22 = scalar_lea.vmem %s1379_s20, 256  ;;  %p1123_p9 = scmp.lt.s32.totalorder %s1379_s20, %s1379_s20 }
  0x5e   : > { %p1116_p6 = scmp.ne.s32.totalorder %s1379_s20, %s1115_s22  ;;  %p1124_p12 = scmp.lt.s32.totalorder %s1115_s22, %s1115_s22 }
  0x60   : > { %p1118_p4 = pnand %p1116_p6, %p1104_p13  ;;  %p1125_p10 = por %p1124_p12, %p1123_p9 }
  0x62   : > { %p1119_p7 = pneg %p1118_p4 }
  0x64   : > { %p1126_p0 = pnand %p1125_p10, %p1119_p7 }
  0x66   : > { %1129 = shalt.err (!%p1126_p0)
}
  0x67   : > { %970 = dma.hbm_to_vmem [thread:$0]  (!%p1392_p5), %s1562_s0, 256, %s1379_s20, [#allocation5], %s1587_s16, %s1587_s16, %s1586_s18  }
  0x68   : > { %p1588_p8 = scmp.ne.s32.totalorder %s1583_s15, 0 }
  0x69   : > { %p1589_p13 = scmp.eq.s32.totalorder (!%p1588_p8), %s1362_s9, 0 }
  0x6a   : > { %319 = sbr.rel (%p1588_p8) target bundleno = 942 (0x3ae), region = 48 }
  0x71   : > { %1181 = dma.done.wait (%p1589_p13), [#allocation5], 256   ;;  %p1590_p2 = pmov %p1589_p13 }
  0x72   : > { %s325_s8 = sand.u32 1, %s1362_s9   ;;  %s327_s17 = sand.u32 1, %s1198_s25  }
  0x73   : > { %1183 = vsyncadd (%p1590_p2), [#allocation5], 4294967040  ;;  %s772_s23 = sshll.u32 %s327_s17, 7  ;;  %s326_s10 = scalar_lea.sflag [#allocation8], %s325_s8 }
  0x74   : > { %s1457_s14 = scalar_lea.vmem [#allocation7], %s772_s23  ;;  %p1591_p3 = scmp.ne.s32.totalorder %s1582_s12, 0 }
  0x76   : > { %1185 = dma.done.wait (%p1591_p3), %s326_s10, 4096  }
  0x77   : > { %1187 = vsyncadd (%p1591_p3), %s326_s10, 4294963200  ;;  %p373_p5 = scmp.lt.s32.totalorder %s1206_s27, 1  ;;  %s1471_s24 = scalar_lea.vmem [#allocation9], %s772_s23 }
  0x78   : > { %p774_p11 = scmp.ne.s32.totalorder %s1206_s27, 0 }
  0x79   : > { %s1465_s15 = scalar_select %p373_p5, %s1206_s27, 1 }
  0x7a   : > { %381 = sbr.rel (%p774_p11) target bundleno = 439 (0x1b7), region = 64  ;;  %v382_v0 = vld [vmem:[#allocation4] sm:$0xff] (!%p774_p11)  ;;  %v383_v2 = vld [vmem:[#allocation4 + $0x8] sm:$0xff] (!%p774_p11) }
  0x7b   : > { %s375_s16 = scalar_lea.vmem %s1566_s4, %s1465_s15  ;;  %v777_v1 = vld [vmem:[%s1568_s6] ss:$0 sm:$0xff] (!%p774_p11)  ;;  %384 = vadd.xlane.f32.xlu0 (!%p774_p11), %v382_v0 }
  0x7c   : > { %v434_v3 = vadd.f32 (!%p774_p11), %v777_v1, %v382_v0  ;;  %v435_v4 = vadd.f32 (!%p774_p11), %v777_v1, %v383_v2  ;;  %v775_v20 = vld [vmem:[%s1563_s1] ss:$0 sm:$0xff] (!%p774_p11) }
  0x7d   : > { %v776_v22 = vld [vmem:[%s1564_s2] ss:$0 sm:$0xff] (!%p774_p11) }
  0x7e   : > { %436 = vst [vmem:[#allocation3] sm:$0xff] (!%p774_p11), %v434_v3  ;;  %437 = vst [vmem:[#allocation3 + $0x8] sm:$0xff] (!%p774_p11), %v435_v4 }
  0x7f   : > { %386 = vadd.xlane.f32.xlu0 (!%p774_p11), %v383_v2 }
 0x108   : > { %v385_v5 = vpop.xlane.xlu0 %384 }
 0x109   : > { %v389_v6 = vmul.f32 0.0078125, %v385_v5 }
 0x10b   : > { %v391_v7 = vsub.f32 %v382_v0, %v389_v6 }
 0x10c   : > { %v387_v8 = vpop.xlane.xlu0 %386 }
 0x10d   : > { %v390_v9 = vmul.f32 0.0078125, %v387_v8  ;;  %v393_v10 = vmul.f32 %v391_v7, %v391_v7 }
 0x10f   : > { %v392_v11 = vsub.f32 %v383_v2, %v390_v9  ;;  %395 = vadd.xlane.f32.xlu1 %v393_v10 }
 0x111   : > { %v394_v12 = vmul.f32 %v392_v11, %v392_v11 }
 0x113   : > { %397 = vadd.xlane.f32.xlu1 %v394_v12 }
 0x19c   : > { %v396_v13 = vpop.xlane.xlu1 %395 }
 0x19d   : > { %v399_v14 = vmul.f32 0.0078125, %v396_v13 }
 0x19f   : > { %v401_v15 = vadd.f32 1e-05, %v399_v14 }
 0x1a0   : > { %v398_v16 = vpop.xlane.xlu1 %397 }
 0x1a1   : > { %1038 = vrsqrt.f32 %v401_v15  ;;  %v400_v17 = vmul.f32 0.0078125, %v398_v16 }
 0x1a3   : > { %v402_v18 = vadd.f32 1e-05, %v400_v17 }
 0x1a5   : > { %1040 = vrsqrt.f32 %v402_v18 }
 0x1ab   : > { %v1039_v19 = vpop.eup %1038 }
 0x1ac   : > { %v405_v21 = vmul.f32 %v1039_v19, %v391_v7 }
 0x1ae   : > { %v414_v23 = vmul.f32 %v775_v20, %v405_v21 }
 0x1af   : > { %v1041_v24 = vpop.eup %1040 }
 0x1b0   : > { %v423_v25 = vadd.f32 %v776_v22, %v414_v23  ;;  %v406_v26 = vmul.f32 %v1041_v24, %v392_v11 }
 0x1b2   : > { %425 = vst [vmem:[#allocation2] sm:$0xff] %v423_v25  ;;  %v415_v27 = vmul.f32 %v775_v20, %v406_v26 }
 0x1b4   : > { %v424_v28 = vadd.f32 %v776_v22, %v415_v27 }
 0x1b6   : > { %426 = vst [vmem:[#allocation2 + $0x8] sm:$0xff] %v424_v28 }
 0x1b7 PF: > { %v440_v29 = vld [vmem:[%s1457_s14] sm:$0xff]  ;;  %v441_v30 = vld [vmem:[%s1457_s14 + $0x8] sm:$0xff]  ;;  %v442_v31 = vld [vmem:[%s1457_s14 + $0x10] sm:$0xff]  ;;  %p779_p1 = scmp.ne.s32.totalorder %s1206_s27, 1 }
 0x1b8   : > { %v891_v32 = vpack.c.bf16 %v441_v30, %v440_v29  ;;  %v443_v33 = vld [vmem:[%s1457_s14 + $0x18] sm:$0xff]  ;;  %v444_v35 = vld [vmem:[%s1457_s14 + $0x20] sm:$0xff]  ;;  %v445_v36 = vld [vmem:[%s1457_s14 + $0x28] sm:$0xff] }
 0x1b9   : > { %v895_v34 = vpack.c.bf16 %v443_v33, %v442_v31  ;;  %v899_v37 = vpack.c.bf16 %v445_v36, %v444_v35  ;;  %v446_v38 = vld [vmem:[%s1457_s14 + $0x30] sm:$0xff]  ;;  %v447_v39 = vld [vmem:[%s1457_s14 + $0x38] sm:$0xff]  ;;  %v542_v41 = vld [vmem:[%s1471_s24] sm:$0xff] }
 0x1ba   : > { %892 = vmatprep.subr.bf16.mxu0 %v891_v32  ;;  %v438_v40 = vld [vmem:[#allocation2] sm:$0xff]  ;;  %v543_v42 = vld [vmem:[%s1471_s24 + $0x8] sm:$0xff]  ;;  %v545_v45 = vld [vmem:[%s1471_s24 + $0x18] sm:$0xff]  ;;  %v903_v49 = vpack.c.bf16 %v447_v39, %v446_v38 }
 0x1bb   : > { %894 = vmatpush3.bf16.msra.mxu0 %v891_v32  ;;  %853 = vmatprep.mubr.f32.mxu0 %v438_v40  ;;  %v544_v43 = vld [vmem:[%s1471_s24 + $0x10] sm:$0xff]  ;;  %v923_v44 = vpack.c.bf16 %v543_v42, %v542_v41  ;;  %v546_v47 = vld [vmem:[%s1471_s24 + $0x20] sm:$0xff]  ;;  %v547_v48 = vld [vmem:[%s1471_s24 + $0x28] sm:$0xff] }
 0x1bc   : > { %896 = vmatprep.subr.bf16.mxu0 %v895_v34  ;;  %v927_v46 = vpack.c.bf16 %v545_v45, %v544_v43  ;;  %v448_v50 = vld [vmem:[%s1457_s14 + $0x40] sm:$0xff]  ;;  %v449_v51 = vld [vmem:[%s1457_s14 + $0x48] sm:$0xff]  ;;  %v931_v52 = vpack.c.bf16 %v547_v48, %v546_v47  ;;  %v548_v53 = vld [vmem:[%s1471_s24 + $0x30] sm:$0xff] }
 0x1bd   : > { %924 = vmatprep.subr.bf16.mxu1 %v923_v44  ;;  %v549_v54 = vld [vmem:[%s1471_s24 + $0x38] sm:$0xff]  ;;  %v907_v55 = vpack.c.bf16 %v449_v51, %v448_v50  ;;  %v450_v56 = vld [vmem:[%s1457_s14 + $0x50] sm:$0xff]  ;;  %v550_v59 = vld [vmem:[%s1471_s24 + $0x40] sm:$0xff] }
 0x1be   : > { %926 = vmatpush3.bf16.msra.mxu1 %v923_v44  ;;  %v451_v57 = vld [vmem:[%s1457_s14 + $0x58] sm:$0xff]  ;;  %v935_v58 = vpack.c.bf16 %v549_v54, %v548_v53  ;;  %v551_v60 = vld [vmem:[%s1471_s24 + $0x48] sm:$0xff]  ;;  %v452_v62 = vld [vmem:[%s1457_s14 + $0x60] sm:$0xff] }
 0x1bf   : > { %898 = vmatpush3.bf16.msra.mxu0 %v895_v34  ;;  %928 = vmatprep.subr.bf16.mxu1 %v927_v46  ;;  %v911_v61 = vpack.c.bf16 %v451_v57, %v450_v56  ;;  %v453_v63 = vld [vmem:[%s1457_s14 + $0x68] sm:$0xff]  ;;  %v939_v0 = vpack.c.bf16 %v551_v60, %v550_v59  ;;  %v552_v1 = vld [vmem:[%s1471_s24 + $0x50] sm:$0xff]  ;;  %v553_v2 = vld [vmem:[%s1471_s24 + $0x58] sm:$0xff] }
 0x1c0   : > { %900 = vmatprep.subr.bf16.mxu0 %v899_v37  ;;  %v915_v3 = vpack.c.bf16 %v453_v63, %v452_v62  ;;  %v454_v4 = vld [vmem:[%s1457_s14 + $0x70] sm:$0xff]  ;;  %v455_v5 = vld [vmem:[%s1457_s14 + $0x78] sm:$0xff]  ;;  %v943_v6 = vpack.c.bf16 %v553_v2, %v552_v1  ;;  %v554_v7 = vld [vmem:[%s1471_s24 + $0x60] sm:$0xff] }
 0x1c1   : > { %v555_v8 = vld [vmem:[%s1471_s24 + $0x68] sm:$0xff]  ;;  %v919_v9 = vpack.c.bf16 %v455_v5, %v454_v4  ;;  %v439_v11 = vld [vmem:[#allocation2 + $0x8] sm:$0xff]  ;;  %v556_v12 = vld [vmem:[%s1471_s24 + $0x70] sm:$0xff] }
 0x1c2   : > { %930 = vmatpush3.bf16.msra.mxu1 %v927_v46  ;;  %v947_v10 = vpack.c.bf16 %v555_v8, %v554_v7  ;;  %v557_v13 = vld [vmem:[%s1471_s24 + $0x78] sm:$0xff]  ;;  %v778_v15 = vld [vmem:[%s375_s16] ss:$0 sm:$0xff]  ;;  %v541_v22 = vld [vmem:[#allocation3 + $0x8] sm:$0xff] }
 0x1c3   : > { %902 = vmatpush3.bf16.msra.mxu0 %v899_v37  ;;  %932 = vmatprep.subr.bf16.mxu1 %v931_v52  ;;  %v951_v14 = vpack.c.bf16 %v557_v13, %v556_v12  ;;  %v540_v23 = vld [vmem:[#allocation3] sm:$0xff] }
 0x1c4   : > { %904 = vmatprep.subr.bf16.mxu0 %v903_v49 }
 0x1c6   : > { %934 = vmatpush3.bf16.msra.mxu1 %v931_v52 }
 0x1c7   : > { %906 = vmatpush3.bf16.msra.mxu0 %v903_v49  ;;  %936 = vmatprep.subr.bf16.mxu1 %v935_v58 }
 0x1c8   : > { %908 = vmatprep.subr.bf16.mxu0 %v907_v55 }
 0x1ca   : > { %938 = vmatpush3.bf16.msra.mxu1 %v935_v58 }
 0x1cb   : > { %910 = vmatpush3.bf16.msra.mxu0 %v907_v55  ;;  %940 = vmatprep.subr.bf16.mxu1 %v939_v0 }
 0x1cc   : > { %912 = vmatprep.subr.bf16.mxu0 %v911_v61 }
 0x1ce   : > { %942 = vmatpush3.bf16.msra.mxu1 %v939_v0 }
 0x1cf   : > { %914 = vmatpush3.bf16.msra.mxu0 %v911_v61  ;;  %944 = vmatprep.subr.bf16.mxu1 %v943_v6 }
 0x1d0   : > { %916 = vmatprep.subr.bf16.mxu0 %v915_v3 }
 0x1d2   : > { %946 = vmatpush3.bf16.msra.mxu1 %v943_v6 }
 0x1d3   : > { %918 = vmatpush3.bf16.msra.mxu0 %v915_v3  ;;  %948 = vmatprep.subr.bf16.mxu1 %v947_v10 }
 0x1d4   : > { %920 = vmatprep.subr.bf16.mxu0 %v919_v9 }
 0x1d6   : > { %950 = vmatpush3.bf16.msra.mxu1 %v947_v10 }
 0x1d7   : > { %922 = vmatpush3.bf16.msra.mxu0 %v919_v9  ;;  %952 = vmatprep.subr.bf16.mxu1 %v951_v14 }
 0x1da   : > { %854 = vmatmul.mubr.f32.vlgmr.msra.gmra.mrb[0].mxu0 %v439_v11  ;;  %954 = vmatpush3.bf16.msra.mxu1 %v951_v14 }
 0x2ad   : > { %v855_v16 = vpop.f32.mrb[0].mxu0 }
 0x2ae   : > { %v535_v17 = vadd.f32 %v855_v16, %v778_v15  ;;  %v529_v18 = vpop.f32.mrb[1].mxu0 }
 0x2af   : > { %v530_v19 = vadd.f32 %v778_v15, %v529_v18 }
 0x2b0   : > { %v539_v21 = vmax.f32 %v535_v17, 0.0 }
 0x2b1   : > { %v538_v20 = vmax.f32 %v530_v19, 0.0 }
 0x2b3   : > { %888 = vmatprep.mubr.f32.mxu1 %v538_v20 }
 0x2b4   : > { %889 = vmatmul.mubr.f32.vlgmr.msra.gmra.mrb[0].mxu1 %v539_v21 }
 0x385   : > { %640 = sbr.rel (%p779_p1) target bundleno = 916 (0x394), region = 68 }
 0x387   : > { %v890_v24 = vpop.f32.mrb[0].mxu1 }
 0x388   : > { %v634_v25 = vadd.f32 %v890_v24, %v541_v22  ;;  %v624_v26 = vpop.f32.mrb[1].mxu1 }
 0x389   : > { %v633_v27 = vadd.f32 %v624_v26, %v540_v23 }
 0x38a   : > { %636 = vst [vmem:[#allocation3 + $0x8] sm:$0xff] %v634_v25 }
 0x38b   : > { %635 = vst [vmem:[#allocation3] sm:$0xff] %v633_v27 }
 0x391   : > { %v642_v29 = vld [vmem:[#allocation3 + $0x8] sm:$0xff] }
 0x392   : > { %v641_v28 = vld [vmem:[#allocation3] sm:$0xff]  ;;  %644 = vst [vmem:[#allocation10 + $0x8] sm:$0xff] %v642_v29 }
 0x393   : > { %643 = vst [vmem:[#allocation10] sm:$0xff] %v641_v28 }
 0x394 PF: > { %p981_p6 = scmp.eq.s32.totalorder %s1362_s9, 1  ;;  %s1222_s17 = smov [#allocation10]  }
 0x395   : > { %s654_s23 = sshll.u32 %s1222_s17, 4  ;;  %s655_s23 = int_to_ptr.vmem [resolvable:$true] %s654_s23 }
 0x396   : > { %s1130_s10 = scalar_lea.vmem %s655_s23, 256  ;;  %p1137_p12 = scmp.lt.s32.totalorder %s655_s23, %s655_s23 }
 0x397   : > { %p1131_p4 = scmp.ne.s32.totalorder %s655_s23, %s1130_s10  ;;  %p1138_p10 = scmp.lt.s32.totalorder %s1130_s10, %s1130_s10 }
 0x399   : > { %p1132_p7 = pnand %p1131_p4, %p981_p6  ;;  %p1139_p0 = por %p1138_p10, %p1137_p12 }
 0x39b   : > { %p1133_p9 = pneg %p1132_p7 }
 0x39d   : > { %p1140_p8 = pnand %p1139_p0, %p1133_p9 }
 0x39f   : > { %1143 = shalt.err (!%p1140_p8)
}
 0x3a0   : > { %s1144_s15 = scalar_lea.hbm %s1569_s7, 256 }
 0x3a1   : > { %p1145_p13 = scmp.ne.s32.totalorder %s1569_s7, %s1144_s15  ;;  %p1150_p5 = scmp.lt.u32.totalorder %s1144_s15, %s1569_s7 }
 0x3a3   : > { %p1146_p2 = pnand %p1145_p13, %p981_p6 }
 0x3a5   : > { %p1147_p3 = pneg %p1146_p2 }
 0x3a7   : > { %p1152_p11 = pnand %p1150_p5, %p1147_p3 }
 0x3a9   : > { %1155 = shalt.err (!%p1152_p11)
}
 0x3aa   : > { %s1223_s11 = smov 128   ;;  %s1224_s21 = smov 8  }
 0x3ab   : > { %964 = dma.vmem_to_hbm [thread:$0]  (%p981_p6), %s655_s23, 256, %s1569_s7, [#allocation6], %s1223_s11, %s1223_s11, %s1224_s21  }
 0x3ac   : > { %1189 = dma.done.wait (%p981_p6), [#allocation6], 256  }
 0x3ad   : > { %1191 = vsyncadd (%p981_p6), [#allocation6], 4294967040 }
 0x3ae PF: > { %s22_s29 = sadd.s32 1, %s1214_s29   ;;  %s1592_s24 = smov %s1198_s25 }
 0x3af   : > { %p19_p1 = scmp.ge.s32.totalorder %s22_s29, 4   ;;  %s1593_s25 = smov %s1202_s26 }
 0x3b0   : > { %s1594_s26 = smov %s1312_s13  ;;  %s1595_s27 = smov %s1210_s28 }
 0x3b1   : > { %s1596_s28 = smov %s1598_s30  ;;  %21 = sbr.rel (!%p19_p1) target bundleno = 9 (0x9), region = 114 }
 0x3b8   :  { %670 = vsyncpa [#allocation5], 1 }
 0x3b9   :  { %672 = vsyncpa [#allocation5 + $0x1], 1 }
 0x3ba   :  { %673 = vsyncpa [#allocation8], 1 }
 0x3bb   :  { %675 = vsyncpa [#allocation8 + $0x1], 1 }
 0x3bc   :  { %676 = vsyncpa [#allocation6], 1 }
 0x3bd   :  { %678 = vsyncpa [#allocation6 + $0x1], 1 }

</bundles_post_ra>
